<compile_context>
chip_gen: v7x
topology: tpu7x:2x2x1
jax: 0.10.0
libtpu: 0.0.40
codegen_flags: <defaults>
</compile_context>

<pallas_src>
import functools

import jax
import jax.numpy as jnp
from jax.experimental import pallas as pl
from jax.experimental.pallas import tpu as pltpu

# Small synthetic shapes consistent with the module's forward.
B, S, H, C = 2, 8, 32, 6          # batch, seq, hidden_size, num_classes
VOCAB, NSEG = 64, 2               # synthetic vocab / segment sizes
DR_RATE = 0.1                     # dr_rate (train-mode inverted dropout)

HP = 128                          # lane-dense padded hidden / class width

# Packed parameter slab layout ([SLAB_ROWS, HP] f32).  All offsets are
# multiples of 8 so in-kernel slices stay sublane-aligned.
WORD_OFF = 0                      # word embedding table   rows [  0,  64)
SEG_OFF = WORD_OFF + VOCAB        # segment embedding tbl  rows [ 64,  72)
WPOOL_OFF = SEG_OFF + 8           # pooler dense weight    rows [ 72, 200)
BPOOL_OFF = WPOOL_OFF + HP        # pooler dense bias      rows [200, 208)
WCLS_OFF = BPOOL_OFF + 8          # classifier weight      rows [208, 336)
BCLS_OFF = WCLS_OFF + HP          # classifier bias        rows [336, 344)
SLAB_ROWS = BCLS_OFF + 8          # 344 rows * 128 lanes * 4 B = 176 KB (VMEM)


def bert_classifier_kernel(tok_ref, seg_ref, vl_ref, seed_ref,  # SMEM (scalar prefetch)
                           slab_ref,                            # VMEM [SLAB_ROWS, HP]
                           out_ref,                             # VMEM [B, HP] logits (lane-padded)
                           *, dr_rate):
    # --- fused embedding lookup + gen_attention_mask + masked-mean pooling ---
    # mask[b, s] = 1.0 iff s < valid_length[b]; applied as a scalar weight
    # during the gather-accumulate (no [B,S] mask tensor, no relayout).
    row_sel_iota = jax.lax.broadcasted_iota(jnp.int32, (B, 1), 0)   # hoisted
    cls_vec = jnp.zeros((B, HP), jnp.float32)
    for b in range(B):                           # B=2: static unroll
        acc = jnp.zeros((1, HP), jnp.float32)
        for s in range(S):                       # S=8: static unroll
            tid = tok_ref[b, s]
            sid = seg_ref[b, s]
            keep = (s < vl_ref[b]).astype(jnp.float32)          # mask bit
            row = (slab_ref[pl.ds(WORD_OFF + tid, 1), :]
                   + slab_ref[pl.ds(SEG_OFF + sid, 1), :])      # [1, HP]
            acc = acc + row * keep
        denom = jnp.maximum(jnp.minimum(vl_ref[b], S), 1).astype(jnp.float32)
        sel_b = (row_sel_iota == b).astype(jnp.float32)         # [B, 1]
        cls_vec = cls_vec + sel_b * (acc / denom)               # place row b

    # --- BERT pooler head stand-in: dense + tanh ---
    w_pool = slab_ref[WPOOL_OFF:WPOOL_OFF + HP, :]              # [HP, HP]
    b_pool = slab_ref[BPOOL_OFF:BPOOL_OFF + 1, :]               # [1, HP]
    pooled = jnp.tanh(
        jnp.dot(cls_vec, w_pool, preferred_element_type=jnp.float32) + b_pool)

    # --- dropout (nn.Dropout(p=dr_rate), train-mode inverted dropout) ---
    if dr_rate:
        # Stateless integer-hash PRNG on the VPU; raw bits compared against an
        # integer threshold (no int->float convert).  program_id is mixed in
        # so multi-step grids would draw independent masks.
        # TODO(synk): pltpu.prng_random_bits has no interpret/CPU lowering, so
        # the hardware PRNG is replaced by this xorshift-style hash.
        seed = seed_ref[0] + pl.program_id(0) * jnp.int32(1000003)
        lane = jax.lax.broadcasted_iota(jnp.int32, (B, HP), 1)
        rowi = jax.lax.broadcasted_iota(jnp.int32, (B, HP), 0)
        x = (lane + rowi * jnp.int32(HP)
             + seed * jnp.int32(7919) + jnp.int32(0x09E3779B))
        for _ in range(2):                       # mixing rounds
            x = x ^ (x << 13)
            x = x ^ ((x >> 17) & jnp.int32(0x7FFF))   # logical >>17
            x = x ^ (x << 5)
        thresh = jnp.int32(int(dr_rate * 2147483648.0))           # p * 2^31
        keep = (x & jnp.int32(0x7FFFFFFF)) >= thresh
        pooled = jnp.where(keep, pooled * jnp.float32(1.0 / (1.0 - dr_rate)),
                           0.0)

    # --- classifier: nn.Linear(hidden_size, num_classes), lane-dense store ---
    w_cls = slab_ref[WCLS_OFF:WCLS_OFF + HP, :]                 # [HP, HP]
    b_cls = slab_ref[BCLS_OFF:BCLS_OFF + 1, :]                  # [1, HP]
    out_ref[...] = (jnp.dot(pooled, w_cls, preferred_element_type=jnp.float32)
                    + b_cls)


def init_params(key):
    ks = jax.random.split(key, 6)
    scale = 0.02
    return {
        "word_emb": jax.random.normal(ks[0], (VOCAB, H), jnp.float32) * scale,
        "seg_emb":  jax.random.normal(ks[1], (NSEG, H), jnp.float32) * scale,
        "w_pool":   jax.random.normal(ks[2], (H, H), jnp.float32) * scale,
        "b_pool":   jax.random.normal(ks[3], (H,), jnp.float32) * scale,
        "w_cls":    jax.random.normal(ks[4], (H, C), jnp.float32) * scale,
        "b_cls":    jax.random.normal(ks[5], (C,), jnp.float32) * scale,
    }


def pack_params(params):
    """Pack all tables/weights into one lane-dense [SLAB_ROWS, 128] slab (done once)."""
    slab = jnp.zeros((SLAB_ROWS, HP), jnp.float32)
    slab = slab.at[WORD_OFF:WORD_OFF + VOCAB, :H].set(params["word_emb"])
    slab = slab.at[SEG_OFF:SEG_OFF + NSEG, :H].set(params["seg_emb"])
    slab = slab.at[WPOOL_OFF:WPOOL_OFF + H, :H].set(params["w_pool"])
    slab = slab.at[BPOOL_OFF, :H].set(params["b_pool"])
    slab = slab.at[WCLS_OFF:WCLS_OFF + H, :C].set(params["w_cls"])
    slab = slab.at[BCLS_OFF, :C].set(params["b_cls"])
    return slab


def bert_classifier_forward(token_ids, valid_length, segment_ids, slab,
                            *, dr_rate=DR_RATE, training=True, seed=0):
    tok = token_ids.astype(jnp.int32)
    seg = segment_ids.astype(jnp.int32)
    vl = valid_length.astype(jnp.int32).reshape(B)
    seed_arr = jnp.array([seed], dtype=jnp.int32)

    kernel = functools.partial(
        bert_classifier_kernel,
        dr_rate=(dr_rate if (training and dr_rate) else None))

    # NOTE: grid=(1,) is fine at B=2; for larger batches on v7x, grid over B
    # with dimension_semantics=("parallel",) to use both TensorCores, and
    # tile [B,S,H]-sized operands / cast matmul inputs to bf16 at real sizes.
    logits_pad = pl.pallas_call(
        kernel,
        out_shape=jax.ShapeDtypeStruct((B, HP), jnp.float32),
        grid_spec=pltpu.PrefetchScalarGridSpec(
            num_scalar_prefetch=4,           # token_ids, segment_ids, valid_length, seed -> SMEM
            grid=(1,),
            in_specs=[
                pl.BlockSpec((SLAB_ROWS, HP), lambda i, *_: (0, 0)),  # packed params
            ],
            out_specs=pl.BlockSpec((B, HP), lambda i, *_: (0, 0)),
        ),
        compiler_params=pltpu.CompilerParams(
            dimension_semantics=("arbitrary",)),
    )(tok, seg, vl, seed_arr, slab)

    return logits_pad[:, :C]                 # drop lane padding


def reference_forward(token_ids, valid_length, segment_ids, params):
    """Pure-JAX reference of the same math (eval mode, no dropout)."""
    emb = params["word_emb"][token_ids] + params["seg_emb"][segment_ids]  # [B,S,H]
    mask = (jnp.arange(S)[None, :] < valid_length[:, None]).astype(jnp.float32)
    denom = jnp.maximum(mask.sum(axis=-1, keepdims=True), 1.0)
    cls_vec = (emb * mask[:, :, None]).sum(axis=1) / denom
    pooled = jnp.tanh(cls_vec @ params["w_pool"] + params["b_pool"])
    return pooled @ params["w_cls"] + params["b_cls"]


if __name__ == "__main__":
    key = jax.random.PRNGKey(0)
    k_tok, k_seg, k_par = jax.random.split(key, 3)

    token_ids = jax.random.randint(k_tok, (B, S), 0, VOCAB, dtype=jnp.int32)
    segment_ids = jax.random.randint(k_seg, (B, S), 0, NSEG, dtype=jnp.int32)
    valid_length = jnp.array([5, 8], dtype=jnp.int32)

    params = init_params(k_par)
    slab = pack_params(params)

    # Eval-mode (dropout bypassed) check against the pure-JAX reference.
    logits_eval = bert_classifier_forward(token_ids, valid_length, segment_ids,
                                          slab, dr_rate=DR_RATE, training=False)
    ref = reference_forward(token_ids, valid_length, segment_ids, params)
    assert jnp.allclose(logits_eval, ref, rtol=1e-4, atol=1e-4)

    # Train-mode forward (inverted dropout active), as in training.py.
    logits = bert_classifier_forward(token_ids, valid_length, segment_ids,
                                     slab, dr_rate=DR_RATE, training=True,
                                     seed=0)
    jax.block_until_ready(logits)
    assert logits.shape == (B, C) and logits.dtype == jnp.float32
    assert bool(jnp.all(jnp.isfinite(logits)))
    print("KERNEL_OK")
</pallas_src>

<mosaic_0001>
module attributes {stable_mosaic.version = 11 : i64} {
  func.func @bert_classifier_kernel(%arg0: i32, %arg1: memref<2x8xi32, #tpu.memory_space<smem>>, %arg2: memref<2x8xi32, #tpu.memory_space<smem>>, %arg3: memref<2xi32, #tpu.memory_space<smem>>, %arg4: memref<1xi32, #tpu.memory_space<smem>>, %arg5: memref<344x128xf32, #tpu.memory_space<vmem>>, %arg6: memref<2x128xf32, #tpu.memory_space<vmem>>) attributes {dimension_semantics = [#tpu.dimension_semantics<arbitrary>], iteration_bounds = array<i64: 1>, scalar_prefetch = 4 : i64, scratch_operands = 0 : i64, tpu.core_type = #tpu.core_type<tc>, window_params = [{pipeline_mode = #tpu.pipeline_mode<synchronous>, transform_indices = @transform_0, window_bounds = array<i64: 344, 128>}, {pipeline_mode = #tpu.pipeline_mode<synchronous>, transform_indices = @transform_1, window_bounds = array<i64: 2, 128>}]} {
    %0 = tpu.iota {dimensions = array<i32: 0>} : vector<2x1xi32>
    %cst = arith.constant 0.000000e+00 : f32
    %1 = vector.broadcast %cst : f32 to vector<2x128xf32>
    %cst_0 = arith.constant 0.000000e+00 : f32
    %2 = vector.broadcast %cst_0 : f32 to vector<1x128xf32>
    %c0 = arith.constant 0 : index
    %c0_1 = arith.constant 0 : index
    %3 = memref.load %arg1[%c0, %c0_1] : memref<2x8xi32, #tpu.memory_space<smem>>
    %c0_2 = arith.constant 0 : index
    %c0_3 = arith.constant 0 : index
    %4 = memref.load %arg2[%c0_2, %c0_3] : memref<2x8xi32, #tpu.memory_space<smem>>
    %c0_4 = arith.constant 0 : index
    %5 = memref.load %arg3[%c0_4] : memref<2xi32, #tpu.memory_space<smem>>
    %c0_i32 = arith.constant 0 : i32
    %6 = arith.cmpi sgt, %5, %c0_i32 : i32
    %7 = arith.extui %6 : i1 to i32
    %8 = arith.sitofp %7 : i32 to f32
    %c0_i32_5 = arith.constant 0 : i32
    %9 = arith.addi %c0_i32_5, %3 : i32
    %10 = arith.index_cast %9 : i32 to index
    %c0_6 = arith.constant 0 : index
    %11 = vector.load %arg5[%10, %c0_6] : memref<344x128xf32, #tpu.memory_space<vmem>>, vector<1x128xf32>
    %c64_i32 = arith.constant 64 : i32
    %12 = arith.addi %c64_i32, %4 : i32
    %13 = arith.index_cast %12 : i32 to index
    %c0_7 = arith.constant 0 : index
    %14 = vector.load %arg5[%13, %c0_7] : memref<344x128xf32, #tpu.memory_space<vmem>>, vector<1x128xf32>
    %15 = arith.addf %11, %14 : vector<1x128xf32>
    %16 = vector.broadcast %8 : f32 to vector<1x128xf32>
    %17 = arith.mulf %15, %16 : vector<1x128xf32>
    %18 = arith.addf %2, %17 : vector<1x128xf32>
    %c0_8 = arith.constant 0 : index
    %c1 = arith.constant 1 : index
    %19 = memref.load %arg1[%c0_8, %c1] : memref<2x8xi32, #tpu.memory_space<smem>>
    %c0_9 = arith.constant 0 : index
    %c1_10 = arith.constant 1 : index
    %20 = memref.load %arg2[%c0_9, %c1_10] : memref<2x8xi32, #tpu.memory_space<smem>>
    %c0_11 = arith.constant 0 : index
    %21 = memref.load %arg3[%c0_11] : memref<2xi32, #tpu.memory_space<smem>>
    %c1_i32 = arith.constant 1 : i32
    %22 = arith.cmpi sgt, %21, %c1_i32 : i32
    %23 = arith.extui %22 : i1 to i32
    %24 = arith.sitofp %23 : i32 to f32
    %c0_i32_12 = arith.constant 0 : i32
    %25 = arith.addi %c0_i32_12, %19 : i32
    %26 = arith.index_cast %25 : i32 to index
    %c0_13 = arith.constant 0 : index
    %27 = vector.load %arg5[%26, %c0_13] : memref<344x128xf32, #tpu.memory_space<vmem>>, vector<1x128xf32>
    %c64_i32_14 = arith.constant 64 : i32
    %28 = arith.addi %c64_i32_14, %20 : i32
    %29 = arith.index_cast %28 : i32 to index
    %c0_15 = arith.constant 0 : index
    %30 = vector.load %arg5[%29, %c0_15] : memref<344x128xf32, #tpu.memory_space<vmem>>, vector<1x128xf32>
    %31 = arith.addf %27, %30 : vector<1x128xf32>
    %32 = vector.broadcast %24 : f32 to vector<1x128xf32>
    %33 = arith.mulf %31, %32 : vector<1x128xf32>
    %34 = arith.addf %18, %33 : vector<1x128xf32>
    %c0_16 = arith.constant 0 : index
    %c2 = arith.constant 2 : index
    %35 = memref.load %arg1[%c0_16, %c2] : memref<2x8xi32, #tpu.memory_space<smem>>
    %c0_17 = arith.constant 0 : index
    %c2_18 = arith.constant 2 : index
    %36 = memref.load %arg2[%c0_17, %c2_18] : memref<2x8xi32, #tpu.memory_space<smem>>
    %c0_19 = arith.constant 0 : index
    %37 = memref.load %arg3[%c0_19] : memref<2xi32, #tpu.memory_space<smem>>
    %c2_i32 = arith.constant 2 : i32
    %38 = arith.cmpi sgt, %37, %c2_i32 : i32
    %39 = arith.extui %38 : i1 to i32
    %40 = arith.sitofp %39 : i32 to f32
    %c0_i32_20 = arith.constant 0 : i32
    %41 = arith.addi %c0_i32_20, %35 : i32
    %42 = arith.index_cast %41 : i32 to index
    %c0_21 = arith.constant 0 : index
    %43 = vector.load %arg5[%42, %c0_21] : memref<344x128xf32, #tpu.memory_space<vmem>>, vector<1x128xf32>
    %c64_i32_22 = arith.constant 64 : i32
    %44 = arith.addi %c64_i32_22, %36 : i32
    %45 = arith.index_cast %44 : i32 to index
    %c0_23 = arith.constant 0 : index
    %46 = vector.load %arg5[%45, %c0_23] : memref<344x128xf32, #tpu.memory_space<vmem>>, vector<1x128xf32>
    %47 = arith.addf %43, %46 : vector<1x128xf32>
    %48 = vector.broadcast %40 : f32 to vector<1x128xf32>
    %49 = arith.mulf %47, %48 : vector<1x128xf32>
    %50 = arith.addf %34, %49 : vector<1x128xf32>
    %c0_24 = arith.constant 0 : index
    %c3 = arith.constant 3 : index
    %51 = memref.load %arg1[%c0_24, %c3] : memref<2x8xi32, #tpu.memory_space<smem>>
    %c0_25 = arith.constant 0 : index
    %c3_26 = arith.constant 3 : index
    %52 = memref.load %arg2[%c0_25, %c3_26] : memref<2x8xi32, #tpu.memory_space<smem>>
    %c0_27 = arith.constant 0 : index
    %53 = memref.load %arg3[%c0_27] : memref<2xi32, #tpu.memory_space<smem>>
    %c3_i32 = arith.constant 3 : i32
    %54 = arith.cmpi sgt, %53, %c3_i32 : i32
    %55 = arith.extui %54 : i1 to i32
    %56 = arith.sitofp %55 : i32 to f32
    %c0_i32_28 = arith.constant 0 : i32
    %57 = arith.addi %c0_i32_28, %51 : i32
    %58 = arith.index_cast %57 : i32 to index
    %c0_29 = arith.constant 0 : index
    %59 = vector.load %arg5[%58, %c0_29] : memref<344x128xf32, #tpu.memory_space<vmem>>, vector<1x128xf32>
    %c64_i32_30 = arith.constant 64 : i32
    %60 = arith.addi %c64_i32_30, %52 : i32
    %61 = arith.index_cast %60 : i32 to index
    %c0_31 = arith.constant 0 : index
    %62 = vector.load %arg5[%61, %c0_31] : memref<344x128xf32, #tpu.memory_space<vmem>>, vector<1x128xf32>
    %63 = arith.addf %59, %62 : vector<1x128xf32>
    %64 = vector.broadcast %56 : f32 to vector<1x128xf32>
    %65 = arith.mulf %63, %64 : vector<1x128xf32>
    %66 = arith.addf %50, %65 : vector<1x128xf32>
    %c0_32 = arith.constant 0 : index
    %c4 = arith.constant 4 : index
    %67 = memref.load %arg1[%c0_32, %c4] : memref<2x8xi32, #tpu.memory_space<smem>>
    %c0_33 = arith.constant 0 : index
    %c4_34 = arith.constant 4 : index
    %68 = memref.load %arg2[%c0_33, %c4_34] : memref<2x8xi32, #tpu.memory_space<smem>>
    %c0_35 = arith.constant 0 : index
    %69 = memref.load %arg3[%c0_35] : memref<2xi32, #tpu.memory_space<smem>>
    %c4_i32 = arith.constant 4 : i32
    %70 = arith.cmpi sgt, %69, %c4_i32 : i32
    %71 = arith.extui %70 : i1 to i32
    %72 = arith.sitofp %71 : i32 to f32
    %c0_i32_36 = arith.constant 0 : i32
    %73 = arith.addi %c0_i32_36, %67 : i32
    %74 = arith.index_cast %73 : i32 to index
    %c0_37 = arith.constant 0 : index
    %75 = vector.load %arg5[%74, %c0_37] : memref<344x128xf32, #tpu.memory_space<vmem>>, vector<1x128xf32>
    %c64_i32_38 = arith.constant 64 : i32
    %76 = arith.addi %c64_i32_38, %68 : i32
    %77 = arith.index_cast %76 : i32 to index
    %c0_39 = arith.constant 0 : index
    %78 = vector.load %arg5[%77, %c0_39] : memref<344x128xf32, #tpu.memory_space<vmem>>, vector<1x128xf32>
    %79 = arith.addf %75, %78 : vector<1x128xf32>
    %80 = vector.broadcast %72 : f32 to vector<1x128xf32>
    %81 = arith.mulf %79, %80 : vector<1x128xf32>
    %82 = arith.addf %66, %81 : vector<1x128xf32>
    %c0_40 = arith.constant 0 : index
    %c5 = arith.constant 5 : index
    %83 = memref.load %arg1[%c0_40, %c5] : memref<2x8xi32, #tpu.memory_space<smem>>
    %c0_41 = arith.constant 0 : index
    %c5_42 = arith.constant 5 : index
    %84 = memref.load %arg2[%c0_41, %c5_42] : memref<2x8xi32, #tpu.memory_space<smem>>
    %c0_43 = arith.constant 0 : index
    %85 = memref.load %arg3[%c0_43] : memref<2xi32, #tpu.memory_space<smem>>
    %c5_i32 = arith.constant 5 : i32
    %86 = arith.cmpi sgt, %85, %c5_i32 : i32
    %87 = arith.extui %86 : i1 to i32
    %88 = arith.sitofp %87 : i32 to f32
    %c0_i32_44 = arith.constant 0 : i32
    %89 = arith.addi %c0_i32_44, %83 : i32
    %90 = arith.index_cast %89 : i32 to index
    %c0_45 = arith.constant 0 : index
    %91 = vector.load %arg5[%90, %c0_45] : memref<344x128xf32, #tpu.memory_space<vmem>>, vector<1x128xf32>
    %c64_i32_46 = arith.constant 64 : i32
    %92 = arith.addi %c64_i32_46, %84 : i32
    %93 = arith.index_cast %92 : i32 to index
    %c0_47 = arith.constant 0 : index
    %94 = vector.load %arg5[%93, %c0_47] : memref<344x128xf32, #tpu.memory_space<vmem>>, vector<1x128xf32>
    %95 = arith.addf %91, %94 : vector<1x128xf32>
    %96 = vector.broadcast %88 : f32 to vector<1x128xf32>
    %97 = arith.mulf %95, %96 : vector<1x128xf32>
    %98 = arith.addf %82, %97 : vector<1x128xf32>
    %c0_48 = arith.constant 0 : index
    %c6 = arith.constant 6 : index
    %99 = memref.load %arg1[%c0_48, %c6] : memref<2x8xi32, #tpu.memory_space<smem>>
    %c0_49 = arith.constant 0 : index
    %c6_50 = arith.constant 6 : index
    %100 = memref.load %arg2[%c0_49, %c6_50] : memref<2x8xi32, #tpu.memory_space<smem>>
    %c0_51 = arith.constant 0 : index
    %101 = memref.load %arg3[%c0_51] : memref<2xi32, #tpu.memory_space<smem>>
    %c6_i32 = arith.constant 6 : i32
    %102 = arith.cmpi sgt, %101, %c6_i32 : i32
    %103 = arith.extui %102 : i1 to i32
    %104 = arith.sitofp %103 : i32 to f32
    %c0_i32_52 = arith.constant 0 : i32
    %105 = arith.addi %c0_i32_52, %99 : i32
    %106 = arith.index_cast %105 : i32 to index
    %c0_53 = arith.constant 0 : index
    %107 = vector.load %arg5[%106, %c0_53] : memref<344x128xf32, #tpu.memory_space<vmem>>, vector<1x128xf32>
    %c64_i32_54 = arith.constant 64 : i32
    %108 = arith.addi %c64_i32_54, %100 : i32
    %109 = arith.index_cast %108 : i32 to index
    %c0_55 = arith.constant 0 : index
    %110 = vector.load %arg5[%109, %c0_55] : memref<344x128xf32, #tpu.memory_space<vmem>>, vector<1x128xf32>
    %111 = arith.addf %107, %110 : vector<1x128xf32>
    %112 = vector.broadcast %104 : f32 to vector<1x128xf32>
    %113 = arith.mulf %111, %112 : vector<1x128xf32>
    %114 = arith.addf %98, %113 : vector<1x128xf32>
    %c0_56 = arith.constant 0 : index
    %c7 = arith.constant 7 : index
    %115 = memref.load %arg1[%c0_56, %c7] : memref<2x8xi32, #tpu.memory_space<smem>>
    %c0_57 = arith.constant 0 : index
    %c7_58 = arith.constant 7 : index
    %116 = memref.load %arg2[%c0_57, %c7_58] : memref<2x8xi32, #tpu.memory_space<smem>>
    %c0_59 = arith.constant 0 : index
    %117 = memref.load %arg3[%c0_59] : memref<2xi32, #tpu.memory_space<smem>>
    %c7_i32 = arith.constant 7 : i32
    %118 = arith.cmpi sgt, %117, %c7_i32 : i32
    %119 = arith.extui %118 : i1 to i32
    %120 = arith.sitofp %119 : i32 to f32
    %c0_i32_60 = arith.constant 0 : i32
    %121 = arith.addi %c0_i32_60, %115 : i32
    %122 = arith.index_cast %121 : i32 to index
    %c0_61 = arith.constant 0 : index
    %123 = vector.load %arg5[%122, %c0_61] : memref<344x128xf32, #tpu.memory_space<vmem>>, vector<1x128xf32>
    %c64_i32_62 = arith.constant 64 : i32
    %124 = arith.addi %c64_i32_62, %116 : i32
    %125 = arith.index_cast %124 : i32 to index
    %c0_63 = arith.constant 0 : index
    %126 = vector.load %arg5[%125, %c0_63] : memref<344x128xf32, #tpu.memory_space<vmem>>, vector<1x128xf32>
    %127 = arith.addf %123, %126 : vector<1x128xf32>
    %128 = vector.broadcast %120 : f32 to vector<1x128xf32>
    %129 = arith.mulf %127, %128 : vector<1x128xf32>
    %130 = arith.addf %114, %129 : vector<1x128xf32>
    %c0_64 = arith.constant 0 : index
    %131 = memref.load %arg3[%c0_64] : memref<2xi32, #tpu.memory_space<smem>>
    %c8_i32 = arith.constant 8 : i32
    %132 = arith.minsi %131, %c8_i32 : i32
    %c1_i32_65 = arith.constant 1 : i32
    %133 = arith.maxsi %132, %c1_i32_65 : i32
    %134 = arith.sitofp %133 : i32 to f32
    %c0_i32_66 = arith.constant 0 : i32
    %135 = vector.broadcast %c0_i32_66 : i32 to vector<2x1xi32>
    %136 = arith.cmpi eq, %0, %135 : vector<2x1xi32>
    %137 = arith.extui %136 : vector<2x1xi1> to vector<2x1xi32>
    %138 = arith.sitofp %137 : vector<2x1xi32> to vector<2x1xf32>
    %139 = vector.broadcast %134 : f32 to vector<1x128xf32>
    %140 = arith.divf %130, %139 : vector<1x128xf32>
    %141 = vector.broadcast %138 : vector<2x1xf32> to vector<2x128xf32>
    %142 = vector.broadcast %140 : vector<1x128xf32> to vector<2x128xf32>
    %143 = arith.mulf %141, %142 : vector<2x128xf32>
    %144 = arith.addf %1, %143 : vector<2x128xf32>
    %cst_67 = arith.constant 0.000000e+00 : f32
    %145 = vector.broadcast %cst_67 : f32 to vector<1x128xf32>
    %c1_68 = arith.constant 1 : index
    %c0_69 = arith.constant 0 : index
    %146 = memref.load %arg1[%c1_68, %c0_69] : memref<2x8xi32, #tpu.memory_space<smem>>
    %c1_70 = arith.constant 1 : index
    %c0_71 = arith.constant 0 : index
    %147 = memref.load %arg2[%c1_70, %c0_71] : memref<2x8xi32, #tpu.memory_space<smem>>
    %c1_72 = arith.constant 1 : index
    %148 = memref.load %arg3[%c1_72] : memref<2xi32, #tpu.memory_space<smem>>
    %c0_i32_73 = arith.constant 0 : i32
    %149 = arith.cmpi sgt, %148, %c0_i32_73 : i32
    %150 = arith.extui %149 : i1 to i32
    %151 = arith.sitofp %150 : i32 to f32
    %c0_i32_74 = arith.constant 0 : i32
    %152 = arith.addi %c0_i32_74, %146 : i32
    %153 = arith.index_cast %152 : i32 to index
    %c0_75 = arith.constant 0 : index
    %154 = vector.load %arg5[%153, %c0_75] : memref<344x128xf32, #tpu.memory_space<vmem>>, vector<1x128xf32>
    %c64_i32_76 = arith.constant 64 : i32
    %155 = arith.addi %c64_i32_76, %147 : i32
    %156 = arith.index_cast %155 : i32 to index
    %c0_77 = arith.constant 0 : index
    %157 = vector.load %arg5[%156, %c0_77] : memref<344x128xf32, #tpu.memory_space<vmem>>, vector<1x128xf32>
    %158 = arith.addf %154, %157 : vector<1x128xf32>
    %159 = vector.broadcast %151 : f32 to vector<1x128xf32>
    %160 = arith.mulf %158, %159 : vector<1x128xf32>
    %161 = arith.addf %145, %160 : vector<1x128xf32>
    %c1_78 = arith.constant 1 : index
    %c1_79 = arith.constant 1 : index
    %162 = memref.load %arg1[%c1_78, %c1_79] : memref<2x8xi32, #tpu.memory_space<smem>>
    %c1_80 = arith.constant 1 : index
    %c1_81 = arith.constant 1 : index
    %163 = memref.load %arg2[%c1_80, %c1_81] : memref<2x8xi32, #tpu.memory_space<smem>>
    %c1_82 = arith.constant 1 : index
    %164 = memref.load %arg3[%c1_82] : memref<2xi32, #tpu.memory_space<smem>>
    %c1_i32_83 = arith.constant 1 : i32
    %165 = arith.cmpi sgt, %164, %c1_i32_83 : i32
    %166 = arith.extui %165 : i1 to i32
    %167 = arith.sitofp %166 : i32 to f32
    %c0_i32_84 = arith.constant 0 : i32
    %168 = arith.addi %c0_i32_84, %162 : i32
    %169 = arith.index_cast %168 : i32 to index
    %c0_85 = arith.constant 0 : index
    %170 = vector.load %arg5[%169, %c0_85] : memref<344x128xf32, #tpu.memory_space<vmem>>, vector<1x128xf32>
    %c64_i32_86 = arith.constant 64 : i32
    %171 = arith.addi %c64_i32_86, %163 : i32
    %172 = arith.index_cast %171 : i32 to index
    %c0_87 = arith.constant 0 : index
    %173 = vector.load %arg5[%172, %c0_87] : memref<344x128xf32, #tpu.memory_space<vmem>>, vector<1x128xf32>
    %174 = arith.addf %170, %173 : vector<1x128xf32>
    %175 = vector.broadcast %167 : f32 to vector<1x128xf32>
    %176 = arith.mulf %174, %175 : vector<1x128xf32>
    %177 = arith.addf %161, %176 : vector<1x128xf32>
    %c1_88 = arith.constant 1 : index
    %c2_89 = arith.constant 2 : index
    %178 = memref.load %arg1[%c1_88, %c2_89] : memref<2x8xi32, #tpu.memory_space<smem>>
    %c1_90 = arith.constant 1 : index
    %c2_91 = arith.constant 2 : index
    %179 = memref.load %arg2[%c1_90, %c2_91] : memref<2x8xi32, #tpu.memory_space<smem>>
    %c1_92 = arith.constant 1 : index
    %180 = memref.load %arg3[%c1_92] : memref<2xi32, #tpu.memory_space<smem>>
    %c2_i32_93 = arith.constant 2 : i32
    %181 = arith.cmpi sgt, %180, %c2_i32_93 : i32
    %182 = arith.extui %181 : i1 to i32
    %183 = arith.sitofp %182 : i32 to f32
    %c0_i32_94 = arith.constant 0 : i32
    %184 = arith.addi %c0_i32_94, %178 : i32
    %185 = arith.index_cast %184 : i32 to index
    %c0_95 = arith.constant 0 : index
    %186 = vector.load %arg5[%185, %c0_95] : memref<344x128xf32, #tpu.memory_space<vmem>>, vector<1x128xf32>
    %c64_i32_96 = arith.constant 64 : i32
    %187 = arith.addi %c64_i32_96, %179 : i32
    %188 = arith.index_cast %187 : i32 to index
    %c0_97 = arith.constant 0 : index
    %189 = vector.load %arg5[%188, %c0_97] : memref<344x128xf32, #tpu.memory_space<vmem>>, vector<1x128xf32>
    %190 = arith.addf %186, %189 : vector<1x128xf32>
    %191 = vector.broadcast %183 : f32 to vector<1x128xf32>
    %192 = arith.mulf %190, %191 : vector<1x128xf32>
    %193 = arith.addf %177, %192 : vector<1x128xf32>
    %c1_98 = arith.constant 1 : index
    %c3_99 = arith.constant 3 : index
    %194 = memref.load %arg1[%c1_98, %c3_99] : memref<2x8xi32, #tpu.memory_space<smem>>
    %c1_100 = arith.constant 1 : index
    %c3_101 = arith.constant 3 : index
    %195 = memref.load %arg2[%c1_100, %c3_101] : memref<2x8xi32, #tpu.memory_space<smem>>
    %c1_102 = arith.constant 1 : index
    %196 = memref.load %arg3[%c1_102] : memref<2xi32, #tpu.memory_space<smem>>
    %c3_i32_103 = arith.constant 3 : i32
    %197 = arith.cmpi sgt, %196, %c3_i32_103 : i32
    %198 = arith.extui %197 : i1 to i32
    %199 = arith.sitofp %198 : i32 to f32
    %c0_i32_104 = arith.constant 0 : i32
    %200 = arith.addi %c0_i32_104, %194 : i32
    %201 = arith.index_cast %200 : i32 to index
    %c0_105 = arith.constant 0 : index
    %202 = vector.load %arg5[%201, %c0_105] : memref<344x128xf32, #tpu.memory_space<vmem>>, vector<1x128xf32>
    %c64_i32_106 = arith.constant 64 : i32
    %203 = arith.addi %c64_i32_106, %195 : i32
    %204 = arith.index_cast %203 : i32 to index
    %c0_107 = arith.constant 0 : index
    %205 = vector.load %arg5[%204, %c0_107] : memref<344x128xf32, #tpu.memory_space<vmem>>, vector<1x128xf32>
    %206 = arith.addf %202, %205 : vector<1x128xf32>
    %207 = vector.broadcast %199 : f32 to vector<1x128xf32>
    %208 = arith.mulf %206, %207 : vector<1x128xf32>
    %209 = arith.addf %193, %208 : vector<1x128xf32>
    %c1_108 = arith.constant 1 : index
    %c4_109 = arith.constant 4 : index
    %210 = memref.load %arg1[%c1_108, %c4_109] : memref<2x8xi32, #tpu.memory_space<smem>>
    %c1_110 = arith.constant 1 : index
    %c4_111 = arith.constant 4 : index
    %211 = memref.load %arg2[%c1_110, %c4_111] : memref<2x8xi32, #tpu.memory_space<smem>>
    %c1_112 = arith.constant 1 : index
    %212 = memref.load %arg3[%c1_112] : memref<2xi32, #tpu.memory_space<smem>>
    %c4_i32_113 = arith.constant 4 : i32
    %213 = arith.cmpi sgt, %212, %c4_i32_113 : i32
    %214 = arith.extui %213 : i1 to i32
    %215 = arith.sitofp %214 : i32 to f32
    %c0_i32_114 = arith.constant 0 : i32
    %216 = arith.addi %c0_i32_114, %210 : i32
    %217 = arith.index_cast %216 : i32 to index
    %c0_115 = arith.constant 0 : index
    %218 = vector.load %arg5[%217, %c0_115] : memref<344x128xf32, #tpu.memory_space<vmem>>, vector<1x128xf32>
    %c64_i32_116 = arith.constant 64 : i32
    %219 = arith.addi %c64_i32_116, %211 : i32
    %220 = arith.index_cast %219 : i32 to index
    %c0_117 = arith.constant 0 : index
    %221 = vector.load %arg5[%220, %c0_117] : memref<344x128xf32, #tpu.memory_space<vmem>>, vector<1x128xf32>
    %222 = arith.addf %218, %221 : vector<1x128xf32>
    %223 = vector.broadcast %215 : f32 to vector<1x128xf32>
    %224 = arith.mulf %222, %223 : vector<1x128xf32>
    %225 = arith.addf %209, %224 : vector<1x128xf32>
    %c1_118 = arith.constant 1 : index
    %c5_119 = arith.constant 5 : index
    %226 = memref.load %arg1[%c1_118, %c5_119] : memref<2x8xi32, #tpu.memory_space<smem>>
    %c1_120 = arith.constant 1 : index
    %c5_121 = arith.constant 5 : index
    %227 = memref.load %arg2[%c1_120, %c5_121] : memref<2x8xi32, #tpu.memory_space<smem>>
    %c1_122 = arith.constant 1 : index
    %228 = memref.load %arg3[%c1_122] : memref<2xi32, #tpu.memory_space<smem>>
    %c5_i32_123 = arith.constant 5 : i32
    %229 = arith.cmpi sgt, %228, %c5_i32_123 : i32
    %230 = arith.extui %229 : i1 to i32
    %231 = arith.sitofp %230 : i32 to f32
    %c0_i32_124 = arith.constant 0 : i32
    %232 = arith.addi %c0_i32_124, %226 : i32
    %233 = arith.index_cast %232 : i32 to index
    %c0_125 = arith.constant 0 : index
    %234 = vector.load %arg5[%233, %c0_125] : memref<344x128xf32, #tpu.memory_space<vmem>>, vector<1x128xf32>
    %c64_i32_126 = arith.constant 64 : i32
    %235 = arith.addi %c64_i32_126, %227 : i32
    %236 = arith.index_cast %235 : i32 to index
    %c0_127 = arith.constant 0 : index
    %237 = vector.load %arg5[%236, %c0_127] : memref<344x128xf32, #tpu.memory_space<vmem>>, vector<1x128xf32>
    %238 = arith.addf %234, %237 : vector<1x128xf32>
    %239 = vector.broadcast %231 : f32 to vector<1x128xf32>
    %240 = arith.mulf %238, %239 : vector<1x128xf32>
    %241 = arith.addf %225, %240 : vector<1x128xf32>
    %c1_128 = arith.constant 1 : index
    %c6_129 = arith.constant 6 : index
    %242 = memref.load %arg1[%c1_128, %c6_129] : memref<2x8xi32, #tpu.memory_space<smem>>
    %c1_130 = arith.constant 1 : index
    %c6_131 = arith.constant 6 : index
    %243 = memref.load %arg2[%c1_130, %c6_131] : memref<2x8xi32, #tpu.memory_space<smem>>
    %c1_132 = arith.constant 1 : index
    %244 = memref.load %arg3[%c1_132] : memref<2xi32, #tpu.memory_space<smem>>
    %c6_i32_133 = arith.constant 6 : i32
    %245 = arith.cmpi sgt, %244, %c6_i32_133 : i32
    %246 = arith.extui %245 : i1 to i32
    %247 = arith.sitofp %246 : i32 to f32
    %c0_i32_134 = arith.constant 0 : i32
    %248 = arith.addi %c0_i32_134, %242 : i32
    %249 = arith.index_cast %248 : i32 to index
    %c0_135 = arith.constant 0 : index
    %250 = vector.load %arg5[%249, %c0_135] : memref<344x128xf32, #tpu.memory_space<vmem>>, vector<1x128xf32>
    %c64_i32_136 = arith.constant 64 : i32
    %251 = arith.addi %c64_i32_136, %243 : i32
    %252 = arith.index_cast %251 : i32 to index
    %c0_137 = arith.constant 0 : index
    %253 = vector.load %arg5[%252, %c0_137] : memref<344x128xf32, #tpu.memory_space<vmem>>, vector<1x128xf32>
    %254 = arith.addf %250, %253 : vector<1x128xf32>
    %255 = vector.broadcast %247 : f32 to vector<1x128xf32>
    %256 = arith.mulf %254, %255 : vector<1x128xf32>
    %257 = arith.addf %241, %256 : vector<1x128xf32>
    %c1_138 = arith.constant 1 : index
    %c7_139 = arith.constant 7 : index
    %258 = memref.load %arg1[%c1_138, %c7_139] : memref<2x8xi32, #tpu.memory_space<smem>>
    %c1_140 = arith.constant 1 : index
    %c7_141 = arith.constant 7 : index
    %259 = memref.load %arg2[%c1_140, %c7_141] : memref<2x8xi32, #tpu.memory_space<smem>>
    %c1_142 = arith.constant 1 : index
    %260 = memref.load %arg3[%c1_142] : memref<2xi32, #tpu.memory_space<smem>>
    %c7_i32_143 = arith.constant 7 : i32
    %261 = arith.cmpi sgt, %260, %c7_i32_143 : i32
    %262 = arith.extui %261 : i1 to i32
    %263 = arith.sitofp %262 : i32 to f32
    %c0_i32_144 = arith.constant 0 : i32
    %264 = arith.addi %c0_i32_144, %258 : i32
    %265 = arith.index_cast %264 : i32 to index
    %c0_145 = arith.constant 0 : index
    %266 = vector.load %arg5[%265, %c0_145] : memref<344x128xf32, #tpu.memory_space<vmem>>, vector<1x128xf32>
    %c64_i32_146 = arith.constant 64 : i32
    %267 = arith.addi %c64_i32_146, %259 : i32
    %268 = arith.index_cast %267 : i32 to index
    %c0_147 = arith.constant 0 : index
    %269 = vector.load %arg5[%268, %c0_147] : memref<344x128xf32, #tpu.memory_space<vmem>>, vector<1x128xf32>
    %270 = arith.addf %266, %269 : vector<1x128xf32>
    %271 = vector.broadcast %263 : f32 to vector<1x128xf32>
    %272 = arith.mulf %270, %271 : vector<1x128xf32>
    %273 = arith.addf %257, %272 : vector<1x128xf32>
    %c1_148 = arith.constant 1 : index
    %274 = memref.load %arg3[%c1_148] : memref<2xi32, #tpu.memory_space<smem>>
    %c8_i32_149 = arith.constant 8 : i32
    %275 = arith.minsi %274, %c8_i32_149 : i32
    %c1_i32_150 = arith.constant 1 : i32
    %276 = arith.maxsi %275, %c1_i32_150 : i32
    %277 = arith.sitofp %276 : i32 to f32
    %c1_i32_151 = arith.constant 1 : i32
    %278 = vector.broadcast %c1_i32_151 : i32 to vector<2x1xi32>
    %279 = arith.cmpi eq, %0, %278 : vector<2x1xi32>
    %280 = arith.extui %279 : vector<2x1xi1> to vector<2x1xi32>
    %281 = arith.sitofp %280 : vector<2x1xi32> to vector<2x1xf32>
    %282 = vector.broadcast %277 : f32 to vector<1x128xf32>
    %283 = arith.divf %273, %282 : vector<1x128xf32>
    %284 = vector.broadcast %281 : vector<2x1xf32> to vector<2x128xf32>
    %285 = vector.broadcast %283 : vector<1x128xf32> to vector<2x128xf32>
    %286 = arith.mulf %284, %285 : vector<2x128xf32>
    %287 = arith.addf %144, %286 : vector<2x128xf32>
    %c72 = arith.constant 72 : index
    %c0_152 = arith.constant 0 : index
    %288 = vector.load %arg5[%c72, %c0_152] : memref<344x128xf32, #tpu.memory_space<vmem>>, vector<128x128xf32>
    %c200 = arith.constant 200 : index
    %c0_153 = arith.constant 0 : index
    %289 = vector.load %arg5[%c200, %c0_153] : memref<344x128xf32, #tpu.memory_space<vmem>>, vector<1x128xf32>
    %cst_154 = arith.constant dense<0.000000e+00> : vector<2x128xf32>
    %290 = tpu.matmul %287, %288, %cst_154 {dimension_numbers = #tpu.dot_dimension_numbers<[1], [0], [0], [1], [0, 0, 1, 1], [], []>} : vector<2x128xf32>, vector<128x128xf32>, vector<2x128xf32> -> vector<2x128xf32>
    %291 = vector.broadcast %289 : vector<1x128xf32> to vector<2x128xf32>
    %292 = arith.addf %290, %291 : vector<2x128xf32>
    %293 = math.tanh %292 : vector<2x128xf32>
    %c208 = arith.constant 208 : index
    %c0_155 = arith.constant 0 : index
    %294 = vector.load %arg5[%c208, %c0_155] : memref<344x128xf32, #tpu.memory_space<vmem>>, vector<128x128xf32>
    %c336 = arith.constant 336 : index
    %c0_156 = arith.constant 0 : index
    %295 = vector.load %arg5[%c336, %c0_156] : memref<344x128xf32, #tpu.memory_space<vmem>>, vector<1x128xf32>
    %cst_157 = arith.constant dense<0.000000e+00> : vector<2x128xf32>
    %296 = tpu.matmul %293, %294, %cst_157 {dimension_numbers = #tpu.dot_dimension_numbers<[1], [0], [0], [1], [0, 0, 1, 1], [], []>} : vector<2x128xf32>, vector<128x128xf32>, vector<2x128xf32> -> vector<2x128xf32>
    %297 = vector.broadcast %295 : vector<1x128xf32> to vector<2x128xf32>
    %298 = arith.addf %296, %297 : vector<2x128xf32>
    %c0_158 = arith.constant 0 : index
    %c0_159 = arith.constant 0 : index
    %299 = vector.load %arg6[%c0_158, %c0_159] : memref<2x128xf32, #tpu.memory_space<vmem>>, vector<2x128xf32>
    tpu.vector_store %arg6[%c0_158, %c0_159], %298 {strides = array<i32>} : memref<2x128xf32, #tpu.memory_space<vmem>>, vector<2x128xf32>,
    return
  }
  func.func @transform_0(%arg0: i32, %arg1: memref<2x8xi32, #tpu.memory_space<smem>>, %arg2: memref<2x8xi32, #tpu.memory_space<smem>>, %arg3: memref<2xi32, #tpu.memory_space<smem>>, %arg4: memref<1xi32, #tpu.memory_space<smem>>) -> (i32, i32) {
    %c0_i32 = arith.constant 0 : i32
    %c0_i32_0 = arith.constant 0 : i32
    %c0_i32_1 = arith.constant 0 : i32
    return %c0_i32, %c0_i32_0 : i32, i32
  }
  func.func @transform_1(%arg0: i32, %arg1: memref<2x8xi32, #tpu.memory_space<smem>>, %arg2: memref<2x8xi32, #tpu.memory_space<smem>>, %arg3: memref<2xi32, #tpu.memory_space<smem>>, %arg4: memref<1xi32, #tpu.memory_space<smem>>) -> (i32, i32) {
    %c0_i32 = arith.constant 0 : i32
    %c0_i32_0 = arith.constant 0 : i32
    %c0_i32_1 = arith.constant 0 : i32
    return %c0_i32, %c0_i32_0 : i32, i32
  }
}

</mosaic_0001>

<bundles_post_ra>
// kernel: tpu_custom_call.1
= control target key start
LH: loop header
LB: loop body
LE: loop exit
PB: predicated region body
PF: predicated region fallthrough
CT: control target
= control target key end

     0   :  { %s1172_s0 = inlined_call_operand.vmem [shape: s32[2,8], index: 0, kind: input, shape index: {}]   ;;  %s1173_s3 = inlined_call_operand.<no memory space> [shape: s32[1], index: 3, kind: input, shape index: {}]   ;;  %s1174_s4 = inlined_call_operand.hbm [shape: f32[344,128], index: 4, kind: input, shape index: {}]   ;;  %s1175_s5 = inlined_call_operand.hbm [shape: f32[2,128], index: 5, kind: output, shape index: {}]   ;;  %s1176_s1 = inlined_call_operand.vmem [shape: s32[2,8], index: 1, kind: input, shape index: {}]   ;;  %s1177_s2 = inlined_call_operand.vmem [shape: s32[2], index: 2, kind: input, shape index: {}]  }
   0x1   :  { %1182 = sst [smem:[#allocation24_spill]] %s1175_s5  ;;  %s10_s20 = sshll.u32 %s1172_s0, 4  ;;  %s11_s20 = int_to_ptr.vmem [resolvable:$true] %s10_s20 }
   0x2   :  { %s14_s3 = sshll.u32 %s1176_s1, 4  ;;  %s784_s23 = scalar_lea.vmem %s11_s20, 32  ;;  %s15_s3 = int_to_ptr.vmem [resolvable:$true] %s14_s3 }
   0x3   :  { %p785_p0 = scmp.ne.s32.totalorder %s11_s20, %s784_s23  ;;  %p789_p1 = scmp.lt.s32.totalorder %s11_s20, %s11_s20 }
   0x4   :  { %p790_p2 = scmp.lt.s32.totalorder %s784_s23, %s784_s23 }
   0x6   :  { %p791_p3 = por %p790_p2, %p789_p1 }
   0x8   :  { %p792_p4 = pnand %p791_p3, %p785_p0 }
   0xa   :  { %795 = shalt.err (!%p792_p4)  }
   0xb   :  { %s870_s24 = smov [#allocation3]   ;;  %s796_s25 = scalar_lea.vmem %s15_s3, 32 }
   0xc   :  { %13 = dma.vmem_to_smem %s11_s20, 32, %s870_s24, [#allocation2] }
   0xd   :  { %p797_p5 = scmp.ne.s32.totalorder %s15_s3, %s796_s25  ;;  %p801_p6 = scmp.lt.s32.totalorder %s15_s3, %s15_s3 }
   0xe   :  { %p802_p7 = scmp.lt.s32.totalorder %s796_s25, %s796_s25 }
  0x10   :  { %p803_p8 = por %p802_p7, %p801_p6 }
  0x12   :  { %p804_p9 = pnand %p803_p8, %p797_p5 }
  0x14   :  { %807 = shalt.err (!%p804_p9)  }
  0x15   :  { %s871_s0 = smov [#allocation4]   ;;  %s18_s27 = sshll.u32 %s1177_s2, 4  ;;  %s19_s27 = int_to_ptr.vmem [resolvable:$true] %s18_s27 }
  0x16   :  { %17 = dma.vmem_to_smem %s15_s3, 32, %s871_s0, [#allocation2] }
  0x17   :  { %s808_s28 = scalar_lea.vmem %s19_s27, 16  ;;  %p813_p11 = scmp.lt.s32.totalorder %s19_s27, %s19_s27 }
  0x18   :  { %p809_p10 = scmp.ne.s32.totalorder %s19_s27, %s808_s28  ;;  %p814_p12 = scmp.lt.s32.totalorder %s808_s28, %s808_s28 }
  0x1a   :  { %p815_p13 = por %p814_p12, %p813_p11 }
  0x1c   :  { %p816_p0 = pnand %p815_p13, %p809_p10 }
  0x1e   :  { %819 = shalt.err (!%p816_p0)  }
  0x1f   :  { %s872_s29 = smov [#allocation5]  }
  0x20   :  { %21 = dma.vmem_to_smem %s19_s27, 16, %s872_s29, [#allocation2] }
  0x21   :  { %864 = dma.done.wait [#allocation2], 80 }
  0x22   :  { %865 = vsyncadd [#allocation2], 4294967216 }
  0x23   :  { %24 = sfence }
  0x24   :  { %25 = vsyncpa [#allocation8], 0 }
  0x25   :  { %26 = vsyncpa [#allocation9], 0  ;;  %s873_s30 = smov [#allocation7]   ;;  %s820_s8 = scalar_lea.hbm %s1174_s4, 5504 }
  0x26   :  { %s32_s6 = sshll.u32 %s873_s30, 4  ;;  %p821_p1 = scmp.ne.s32.totalorder %s1174_s4, %s820_s8  ;;  %s33_s6 = int_to_ptr.vmem [resolvable:$true] %s32_s6 }
  0x27   :  { %p824_p2 = scmp.lt.u32.totalorder %s820_s8, %s1174_s4 }
  0x29   :  { %p826_p3 = pnand %p824_p2, %p821_p1 }
  0x2b   :  { %829 = shalt.err (!%p826_p3)
}
  0x2c   :  { %s830_s13 = scalar_lea.vmem %s33_s6, 5504  ;;  %p835_p5 = scmp.lt.s32.totalorder %s33_s6, %s33_s6 }
  0x2d   :  { %p831_p4 = scmp.ne.s32.totalorder %s33_s6, %s830_s13  ;;  %p836_p6 = scmp.lt.s32.totalorder %s830_s13, %s830_s13 }
  0x2f   :  { %p837_p7 = por %p836_p6, %p835_p5 }
  0x31   :  { %p838_p8 = pnand %p837_p7, %p831_p4 }
  0x33   :  { %841 = shalt.err (!%p838_p8)
}
  0x34   :  { %s874_s14 = smov 128   ;;  %s875_s15 = smov 8  }
  0x35   :  { %38 = dma.hbm_to_vmem [thread:$0]  %s1174_s4, 5504, %s33_s6, [#allocation8], %s874_s14, %s874_s14, %s875_s15  }
  0x36   :  { %866 = dma.done.wait [#allocation8], 5504  }
  0x37   :  { %867 = vsyncadd [#allocation8], 4294961792  ;;  %v876_v0 = vmov 0.0|0.0   ;;  %vm877_vm0 = vmmov 0   ;;  %v878_v1 = vmov 0.0   ;;  %s933_s18 = sld [smem:[#allocation3]] }
  0x38   :  { %720 = vmatprep.subr.bf16.mxu0 %v876_v0  ;;  %682 = vmatprep.mubr.msk.f32.mxu0 %vm877_vm0, %v878_v1  ;;  %s935_s19 = sld [smem:[#allocation4]]  ;;  %s939_s21 = sld [smem:[#allocation3 + $0x1]]  ;;  %v304_v2 = vld [vmem:[#allocation7 + $0x48] sm:$0xff]  ;;  %v305_v3 = vld [vmem:[#allocation7 + $0x50] sm:$0xff]  ;;  %v306_v4 = vld [vmem:[#allocation7 + $0x58] sm:$0xff] }
  0x39   :  { %s937_s20 = sld [smem:[#allocation5]]  ;;  %744 = vmatprep.subr.bf16.mxu1 %v876_v0  ;;  %717 = vmatprep.mubr.msk.f32.mxu1 %vm877_vm0, %v878_v1  ;;  %s943_s4 = sld [smem:[#allocation4 + $0x1]]  ;;  %v721_v5 = vpack.c.bf16 %v305_v3, %v304_v2  ;;  %v307_v6 = vld [vmem:[#allocation7 + $0x60] sm:$0xff]  ;;  %v308_v8 = vld [vmem:[#allocation7 + $0x68] sm:$0xff]  ;;  %v309_v9 = vld [vmem:[#allocation7 + $0x70] sm:$0xff] }
  0x3a   :  { %s945_s22 = sld [smem:[#allocation3 + $0x2]]  ;;  %s949_s23 = sld [smem:[#allocation3 + $0x3]]  ;;  %v724_v7 = vpack.c.bf16 %v307_v6, %v306_v4  ;;  %v396_v10 = vld [vmem:[#allocation7 + $0xd0] sm:$0xff]  ;;  %v727_v11 = vpack.c.bf16 %v309_v9, %v308_v8  ;;  %v397_v12 = vld [vmem:[#allocation7 + $0xd8] sm:$0xff]  ;;  %v398_v13 = vld [vmem:[#allocation7 + $0xe0] sm:$0xff] }
  0x3b   :  { %s947_s3 = sld [smem:[#allocation4 + $0x2]]  ;;  %s951_s24 = sld [smem:[#allocation4 + $0x3]]  ;;  %722 = vmatpush3.bf16.msra.mxu0 %v721_v5  ;;  %v310_v14 = vld [vmem:[#allocation7 + $0x78] sm:$0xff]  ;;  %v311_v15 = vld [vmem:[#allocation7 + $0x80] sm:$0xff]  ;;  %v745_v16 = vpack.c.bf16 %v397_v12, %v396_v10  ;;  %v399_v17 = vld [vmem:[#allocation7 + $0xe8] sm:$0xff] }
  0x3c   :  { %s953_s25 = sld [smem:[#allocation3 + $0x4]]  ;;  %s957_s1 = sld [smem:[#allocation3 + $0x5]]  ;;  %723 = vmatprep.subr.bf16.mxu0 %v876_v0  ;;  %v748_v18 = vpack.c.bf16 %v399_v17, %v398_v13  ;;  %v730_v19 = vpack.c.bf16 %v311_v15, %v310_v14  ;;  %v400_v20 = vld [vmem:[#allocation7 + $0xf0] sm:$0xff]  ;;  %v401_v21 = vld [vmem:[#allocation7 + $0xf8] sm:$0xff]  ;;  %v312_v22 = vld [vmem:[#allocation7 + $0x88] sm:$0xff] }
  0x3d   :  { %s955_s0 = sld [smem:[#allocation4 + $0x4]]  ;;  %746 = vmatpush3.bf16.msra.mxu1 %v745_v16  ;;  %v313_v23 = vld [vmem:[#allocation7 + $0x90] sm:$0xff]  ;;  %s984_s9 = sld [smem:[#allocation4 + $0x5]]  ;;  %v751_v24 = vpack.c.bf16 %v401_v21, %v400_v20  ;;  %v402_v26 = vld [vmem:[#allocation7 + $0x100] sm:$0xff]  ;;  %v403_v27 = vld [vmem:[#allocation7 + $0x108] sm:$0xff] }
  0x3e   :  { %747 = vmatprep.subr.bf16.mxu1 %v876_v0  ;;  %v733_v25 = vpack.c.bf16 %v313_v23, %v312_v22  ;;  %v314_v28 = vld [vmem:[#allocation7 + $0x98] sm:$0xff]  ;;  %v315_v29 = vld [vmem:[#allocation7 + $0xa0] sm:$0xff]  ;;  %s990_s11 = sld [smem:[#allocation3 + $0x6]]  ;;  %v754_v30 = vpack.c.bf16 %v403_v27, %v402_v26  ;;  %s997_s14 = sld [smem:[#allocation3 + $0x7]]  ;;  %v404_v32 = vld [vmem:[#allocation7 + $0x110] sm:$0xff] }
  0x3f   :  { %p47_p9 = scmp.gt.s32.totalorder %s937_s20, 0  ;;  %p61_p10 = scmp.gt.s32.totalorder %s937_s20, 1  ;;  %725 = vmatpush3.bf16.msra.mxu0 %v724_v7  ;;  %v736_v31 = vpack.c.bf16 %v315_v29, %v314_v28  ;;  %v405_v33 = vld [vmem:[#allocation7 + $0x118] sm:$0xff]  ;;  %v316_v34 = vld [vmem:[#allocation7 + $0xa8] sm:$0xff]  ;;  %v317_v35 = vld [vmem:[#allocation7 + $0xb0] sm:$0xff] }
  0x40   :  { %p75_p11 = scmp.gt.s32.totalorder %s937_s20, 2  ;;  %726 = vmatprep.subr.bf16.mxu0 %v876_v0  ;;  %p89_p12 = scmp.gt.s32.totalorder %s937_s20, 3  ;;  %v757_v36 = vpack.c.bf16 %v405_v33, %v404_v32  ;;  %v739_v37 = vpack.c.bf16 %v317_v35, %v316_v34  ;;  %v318_v38 = vld [vmem:[#allocation7 + $0xb8] sm:$0xff]  ;;  %v319_v39 = vld [vmem:[#allocation7 + $0xc0] sm:$0xff] }
  0x41   :  { %s961_s26 = scalar_select %p47_p9, 1, 0  ;;  %749 = vmatpush3.bf16.msra.mxu1 %v748_v18  ;;  %v742_v40 = vpack.c.bf16 %v319_v39, %v318_v38 }
  0x42   :  { %1183 = sst [smem:[#allocation14_spill]] %s957_s1  ;;  %p103_p13 = scmp.gt.s32.totalorder %s937_s20, 4  ;;  %750 = vmatprep.subr.bf16.mxu1 %v876_v0 }
  0x43   :  { %s966_s27 = scalar_select %p61_p10, 1, 0  ;;  %728 = vmatpush3.bf16.msra.mxu0 %v727_v11 }
  0x44   :  { %s971_s30 = scalar_select %p75_p11, 1, 0  ;;  %729 = vmatprep.subr.bf16.mxu0 %v876_v0 }
  0x45   :  { %s976_s7 = scalar_select %p89_p12, 1, 0  ;;  %752 = vmatpush3.bf16.msra.mxu1 %v751_v24 }
  0x46   :  { %s982_s8 = scalar_select %p103_p13, 1, 0  ;;  %753 = vmatprep.subr.bf16.mxu1 %v876_v0 }
  0x47   :  { %1184 = sst [smem:[#allocation15_spill]] %s984_s9  ;;  %731 = vmatpush3.bf16.msra.mxu0 %v730_v19  ;;  %p117_p0 = scmp.gt.s32.totalorder %s937_s20, 5 }
  0x48   :  { %732 = vmatprep.subr.bf16.mxu0 %v876_v0  ;;  %1185 = sst [smem:[#allocation16_spill]] %s990_s11  ;;  %s994_s13 = sld [smem:[#allocation4 + $0x6]] }
  0x49   :  { %s992_s12 = scalar_select %p117_p0, 1, 0  ;;  %755 = vmatpush3.bf16.msra.mxu1 %v754_v30 }
  0x4a   :  { %p131_p1 = scmp.gt.s32.totalorder %s937_s20, 6  ;;  %1188 = sst [smem:[#allocation19_spill]] %s997_s14  ;;  %756 = vmatprep.subr.bf16.mxu1 %v876_v0 }
  0x4b   :  { %1186 = sst [smem:[#allocation17_spill]] %s992_s12  ;;  %734 = vmatpush3.bf16.msra.mxu0 %v733_v25  ;;  %s1002_s16 = sld [smem:[#allocation4 + $0x7]] }
  0x4c   :  { %735 = vmatprep.subr.bf16.mxu0 %v876_v0  ;;  %s1006_s17 = scalar_select %p131_p1, 1, 0 }
  0x4d   :  { %p145_p2 = scmp.gt.s32.totalorder %s937_s20, 7  ;;  %p157_p3 = scmp.lt.s32.totalorder %s937_s20, 8  ;;  %758 = vmatpush3.bf16.msra.mxu1 %v757_v36 }
  0x4e   :  { %1187 = sst [smem:[#allocation18_spill]] %s994_s13  ;;  %s1013_s15 = sld [smem:[#allocation3 + $0x80]]  ;;  %759 = vmatprep.subr.bf16.mxu1 %v876_v0 }
  0x4f   :  { %1190 = sst [smem:[#allocation21_spill]] %s1006_s17  ;;  %737 = vmatpush3.bf16.msra.mxu0 %v736_v31  ;;  %s1022_s29 = sld [smem:[#allocation5 + $0x1]] }
  0x50   :  { %738 = vmatprep.subr.bf16.mxu0 %v876_v0  ;;  %s1015_s2 = scalar_select %p145_p2, 1, 0 }
  0x51   :  { %1189 = sst [smem:[#allocation20_spill]] %s1002_s16  ;;  %s1017_s6 = sld [smem:[#allocation4 + $0x80]] }
  0x52   :  { %1191 = sst [smem:[#allocation22_spill]] %s1015_s2  ;;  %s1033_s14 = sld [smem:[#allocation3 + $0x82]] }
  0x53   :  { %740 = vmatpush3.bf16.msra.mxu0 %v739_v37  ;;  %s158_s10 = scalar_select %p157_p3, %s937_s20, 8 }
  0x54   :  { %741 = vmatprep.subr.bf16.mxu0 %v876_v0  ;;  %s1024_s28 = sld [smem:[#allocation3 + $0x81]]  ;;  %s1035_s2 = sld [smem:[#allocation4 + $0x82]] }
  0x55   :  { %s1213_s10 = smov (!%p61_p10, %s158_s10), 1  ;;  %s1030_s5 = sld [smem:[#allocation4 + $0x81]] }
  0x56   :  { %1192 = sst [smem:[#allocation23_spill]] %s1213_s10  ;;  %s1037_s17 = sld [smem:[#allocation3 + $0x83]] }
  0x57   :  { %743 = vmatpush3.bf16.msra.mxu0 %v742_v40  ;;  %s1039_s13 = sld [smem:[#allocation4 + $0x83]]  ;;  %s50_s12 = scalar_lea.vmem [#allocation7], %s933_s18 }
  0x58   :  { %v51_v41 = vld [vmem:[%s50_s12] sm:$0x1]  ;;  %s504_s20 = scalar_lea.vmem [#allocation7], %s935_s19  ;;  %p177_p4 = scmp.gt.s32.totalorder %s1022_s29, 0 }
  0x59   :  { %v551_v42 = vld [vmem:[%s504_s20 + $0x40] sm:$0x1]  ;;  %p191_p5 = scmp.gt.s32.totalorder %s1022_s29, 1  ;;  %s64_s16 = scalar_lea.vmem [#allocation7], %s939_s21 }
  0x5a   :  { %v65_v43 = vld [vmem:[%s64_s16] sm:$0x1]  ;;  %s507_s10 = scalar_lea.vmem [#allocation7], %s943_s4  ;;  %p205_p6 = scmp.gt.s32.totalorder %s1022_s29, 2  ;;  %v55_v45 = vadd.f32 %v551_v42, %v51_v41 }
  0x5b   :  { %v554_v44 = vld [vmem:[%s507_s10 + $0x40] sm:$0x1]  ;;  %s1048_s11 = scalar_select %p177_p4, 1, 0 }
  0x5c   :  { %s1052_s18 = scalar_select %p191_p5, 1, 0  ;;  %v69_v46 = vadd.f32 %v554_v44, %v65_v43 }
  0x5d   :  { %s179_s19 = scvt.s32.f32 %s1048_s11  ;;  %s1193_s21 = scvt.s32.f32 %s961_s26 }
  0x5e   :  { %s1194_s12 = scvt.s32.f32 %s966_s27  ;;  %s78_s4 = scalar_lea.vmem [#allocation7], %s945_s22 }
  0x5f   :  { %v56_v47 = vstv %s1193_s21  ;;  %v79_v49 = vld [vmem:[%s78_s4] sm:$0x1]  ;;  %s510_s10 = scalar_lea.vmem [#allocation7], %s947_s3  ;;  %s193_s16 = scvt.s32.f32 %s1052_s18  ;;  %v186_v63 = vstv %s179_s19 }
  0x60   :  { %v70_v48 = vstv %s1194_s12  ;;  %v557_v50 = vld [vmem:[%s510_s10 + $0x40] sm:$0x1]  ;;  %s180_s20 = scalar_lea.vmem [#allocation7], %s1013_s15  ;;  %s528_s9 = scalar_lea.vmem [#allocation7], %s1017_s6  ;;  %v57_v55 = vmul.f32 %v56_v47, %v55_v45 }
  0x61   :  { %v181_v51 = vld [vmem:[%s180_s20] sm:$0x1]  ;;  %s1066_s1 = scalar_select %p205_p6, 1, 0  ;;  %v71_v56 = vmul.f32 %v70_v48, %v69_v46  ;;  %v83_v57 = vadd.f32 %v557_v50, %v79_v49  ;;  %v200_v2 = vstv %s193_s16 }
  0x62   :  { %v582_v52 = vld [vmem:[%s528_s9 + $0x40] sm:$0x1]  ;;  %s194_s26 = scalar_lea.vmem [#allocation7], %s1024_s28  ;;  %s531_s27 = scalar_lea.vmem [#allocation7], %s1030_s5 }
  0x63   :  { %v195_v53 = vld [vmem:[%s194_s26] sm:$0x1]  ;;  %p219_p7 = scmp.gt.s32.totalorder %s1022_s29, 3  ;;  %s207_s22 = scvt.s32.f32 %s1066_s1  ;;  %v185_v61 = vadd.f32 %v582_v52, %v181_v51  ;;  %v72_v5 = vadd.f32 %v71_v56, %v57_v55 }
  0x64   :  { %v585_v54 = vld [vmem:[%s531_s27 + $0x40] sm:$0x1]  ;;  %s1195_s3 = scvt.s32.f32 %s971_s30  ;;  %s92_s6 = scalar_lea.vmem [#allocation7], %s949_s23 }
  0x65   :  { %v93_v59 = vld [vmem:[%s92_s6] sm:$0x1]  ;;  %s513_s9 = scalar_lea.vmem [#allocation7], %s951_s24  ;;  %v199_v62 = vadd.f32 %v585_v54, %v195_v53  ;;  %s1078_s5 = sld [smem:[#allocation3 + $0x84]]  ;;  %v187_v11 = vmul.f32 %v186_v63, %v185_v61  ;;  %v214_v14 = vstv %s207_s22 }
  0x66   :  { %v84_v58 = vstv %s1195_s3  ;;  %v560_v60 = vld [vmem:[%s513_s9 + $0x40] sm:$0x1]  ;;  %s1076_s15 = scalar_select %p219_p7, 1, 0 }
  0x67   :  { %s208_s28 = scalar_lea.vmem [#allocation7], %s1033_s14  ;;  %s534_s23 = scalar_lea.vmem [#allocation7], %s1035_s2  ;;  %v85_v6 = vmul.f32 %v84_v58, %v83_v57  ;;  %v97_v7 = vadd.f32 %v560_v60, %v93_v59  ;;  %v201_v12 = vmul.f32 %v200_v2, %v199_v62  ;;  %v42_v2 = vlaneseq }
  0x68   :  { %v209_v3 = vld [vmem:[%s208_s28] sm:$0x1]  ;;  %s221_s24 = scvt.s32.f32 %s1076_s15  ;;  %s1085_s30 = sld [smem:[#allocation4 + $0x84]] }
  0x69   :  { %v588_v4 = vld [vmem:[%s534_s23 + $0x40] sm:$0x1]  ;;  %s106_s18 = scalar_lea.vmem [#allocation7], %s953_s25  ;;  %p233_p8 = scmp.gt.s32.totalorder %s1022_s29, 4  ;;  %v86_v17 = vadd.f32 %v85_v6, %v72_v5  ;;  %v202_v23 = vadd.f32 %v201_v12, %v187_v11 }
  0x6a   :  { %v107_v8 = vld [vmem:[%s106_s18] sm:$0x1]  ;;  %s1089_s11 = sld [smem:[#allocation3 + $0x85]]  ;;  %s1196_s19 = scvt.s32.f32 %s976_s7  ;;  %v213_v13 = vadd.f32 %v588_v4, %v209_v3  ;;  %v228_v27 = vstv %s221_s24 }
  0x6b   :  { %s516_s14 = scalar_lea.vmem [#allocation7], %s955_s0  ;;  %s1094_s2 = sld [smem:[#allocation4 + $0x85]] }
  0x6c   :  { %v98_v9 = vstv %s1196_s19  ;;  %v563_v10 = vld [vmem:[%s516_s14 + $0x40] sm:$0x1]  ;;  %p247_p9 = scmp.gt.s32.totalorder %s1022_s29, 5  ;;  %s1197_s21 = sld [smem:[#allocation14_spill]]  ;;  %v215_v24 = vmul.f32 %v214_v14, %v213_v13 }
  0x6d   :  { %s1198_s12 = sld [smem:[#allocation15_spill]]  ;;  %s222_s25 = scalar_lea.vmem [#allocation7], %s1037_s17  ;;  %v99_v18 = vmul.f32 %v98_v9, %v97_v7  ;;  %v111_v19 = vadd.f32 %v563_v10, %v107_v8  ;;  %v43_v10 = vshrl.u32 %v42_v2, 7 }
  0x6e   :  { %s1097_s4 = scalar_select %p233_p8, 1, 0  ;;  %v223_v15 = vld [vmem:[%s222_s25] sm:$0x1]  ;;  %v216_v35 = vadd.f32 %v215_v24, %v202_v23 }
  0x6f   :  { %s537_s7 = scalar_lea.vmem [#allocation7], %s1039_s13  ;;  %s1199_s16 = scvt.s32.f32 %s982_s8  ;;  %v100_v29 = vadd.f32 %v99_v18, %v86_v17  ;;  %vm162_vm1 = vcmp.eq.s32.totalorder %v43_v10, 0  ;;  %vm292_vm2 = vcmp.eq.s32.totalorder %v43_v10, 1 }
  0x70   :  { %v591_v16 = vld [vmem:[%s537_s7 + $0x40] sm:$0x1]  ;;  %s1103_s0 = scalar_select %p247_p9, 1, 0 }
  0x71   :  { %s235_s10 = scvt.s32.f32 %s1097_s4  ;;  %v112_v20 = vstv %s1199_s16  ;;  %s1200_s26 = sld [smem:[#allocation16_spill]]  ;;  %v227_v25 = vadd.f32 %v591_v16, %v223_v15  ;;  %v170_v16 = vsub.s32 0, %v43_v10 }
  0x72   :  { %s120_s20 = scalar_lea.vmem [#allocation7], %s1197_s21  ;;  %s249_s17 = scvt.s32.f32 %s1103_s0  ;;  %v113_v30 = vmul.f32 %v112_v20, %v111_v19  ;;  %v578_v20 = vsel %vm162_vm1, 1.0, %v878_v1 }
  0x73   :  { %v121_v21 = vld [vmem:[%s120_s20] sm:$0x1]  ;;  %s519_s1 = scalar_lea.vmem [#allocation7], %s1198_s12  ;;  %s1201_s13 = sld [smem:[#allocation17_spill]]  ;;  %v229_v36 = vmul.f32 %v228_v27, %v227_v25  ;;  %v242_v38 = vstv %s235_s10 }
  0x74   :  { %v566_v22 = vld [vmem:[%s519_s1 + $0x40] sm:$0x1]  ;;  %s1202_s27 = sld [smem:[#allocation18_spill]]  ;;  %s236_s22 = scalar_lea.vmem [#allocation7], %s1078_s5  ;;  %v114_v41 = vadd.f32 %v113_v30, %v100_v29  ;;  %v256_v51 = vstv %s249_s17  ;;  %v408_v30 = vld [vmem:[#allocation7 + $0x130] sm:$0xff] }
  0x75   :  { %v237_v26 = vld [vmem:[%s236_s22] sm:$0x1]  ;;  %s1112_s3 = sld [smem:[#allocation3 + $0x86]]  ;;  %s540_s8 = scalar_lea.vmem [#allocation7], %s1085_s30  ;;  %v125_v31 = vadd.f32 %v566_v22, %v121_v21  ;;  %v230_v48 = vadd.f32 %v229_v36, %v216_v35  ;;  %v609_v22 = vsel %vm292_vm2, 1.0, %v878_v1 }
  0x76   :  { %v594_v28 = vld [vmem:[%s540_s8 + $0x40] sm:$0x1]  ;;  %s1117_s6 = sld [smem:[#allocation4 + $0x86]]  ;;  %p261_p10 = scmp.gt.s32.totalorder %s1022_s29, 6  ;;  %v610_v1 = vld [vmem:[#allocation7 + $0xc8] ss:$0 sm:$0xff] }
  0x77   :  { %s134_s9 = scalar_lea.vmem [#allocation7], %s1200_s26  ;;  %s1121_s5 = sld [smem:[#allocation3 + $0x87]]  ;;  %v241_v37 = vadd.f32 %v594_v28, %v237_v26  ;;  %v406_v27 = vld [vmem:[#allocation7 + $0x120] sm:$0xff]  ;;  %v407_v28 = vld [vmem:[#allocation7 + $0x128] sm:$0xff] }
  0x78   :  { %v135_v32 = vld [vmem:[%s134_s9] sm:$0x1]  ;;  %s1204_s23 = sld [smem:[#allocation23_spill]]  ;;  %s1126_s24 = sld [smem:[#allocation4 + $0x87]]  ;;  %v760_v29 = vpack.c.bf16 %v407_v28, %v406_v27 }
  0x79   :  { %s1203_s28 = scvt.s32.f32 %s1201_s13  ;;  %s1205_s30 = sld [smem:[#allocation21_spill]]  ;;  %v243_v49 = vmul.f32 %v242_v38, %v241_v37 }
  0x7a   :  { %s522_s15 = scalar_lea.vmem [#allocation7], %s1202_s27  ;;  %p275_p11 = scmp.gt.s32.totalorder %s1022_s29, 7  ;;  %761 = vmatpush3.bf16.msra.mxu1 %v760_v29 }
  0x7b   :  { %v126_v33 = vstv %s1203_s28  ;;  %v569_v34 = vld [vmem:[%s522_s15 + $0x40] sm:$0x1]  ;;  %s1206_s18 = sld [smem:[#allocation22_spill]]  ;;  %s1207_s19 = sld [smem:[#allocation19_spill]]  ;;  %v244_v58 = vadd.f32 %v243_v49, %v230_v48  ;;  %762 = vmatprep.subr.bf16.mxu1 %v876_v0 }
  0x7c   :  { %s1208_s14 = sld [smem:[#allocation20_spill]]  ;;  %s250_s12 = scalar_lea.vmem [#allocation7], %s1089_s11  ;;  %v127_v42 = vmul.f32 %v126_v33, %v125_v31  ;;  %v139_v43 = vadd.f32 %v569_v34, %v135_v32  ;;  %v409_v31 = vld [vmem:[#allocation7 + $0x138] sm:$0xff]  ;;  %v410_v33 = vld [vmem:[#allocation7 + $0x140] sm:$0xff]  ;;  %v411_v34 = vld [vmem:[#allocation7 + $0x148] sm:$0xff] }
  0x7d   :  { %s1129_s21 = scalar_select %p261_p10, 1, 0  ;;  %v251_v39 = vld [vmem:[%s250_s12] sm:$0x1]  ;;  %v763_v32 = vpack.c.bf16 %v409_v31, %v408_v30  ;;  %v766_v35 = vpack.c.bf16 %v411_v34, %v410_v33 }
  0x7e   :  { %s543_s25 = scalar_lea.vmem [#allocation7], %s1094_s2  ;;  %s1209_s16 = scvt.s32.f32 %s1204_s23  ;;  %v128_v54 = vadd.f32 %v127_v42, %v114_v41 }
  0x7f   :  { %v597_v40 = vld [vmem:[%s543_s25 + $0x40] sm:$0x1]  ;;  %s1135_s7 = scalar_select %p275_p11, 1, 0  ;;  %764 = vmatpush3.bf16.msra.mxu1 %v763_v32 }
  0x80   :  { %v165_v44 = vstv %s1209_s16  ;;  %s1210_s20 = scvt.s32.f32 %s1205_s30  ;;  %v255_v50 = vadd.f32 %v597_v40, %v251_v39  ;;  %s263_s2 = scvt.s32.f32 %s1129_s21  ;;  %765 = vmatprep.subr.bf16.mxu1 %v876_v0  ;;  %v611_v40 = vld [vmem:[#allocation7 + $0x150] ss:$0 sm:$0xff] }
  0x81   :  { %s147_s4 = scvt.s32.f32 %s1206_s18  ;;  %s148_s10 = scalar_lea.vmem [#allocation7], %s1207_s19  ;;  %778 = vrcp.f32 %v165_v44 }
  0x82   :  { %v140_v45 = vstv %s1210_s20  ;;  %v149_v46 = vld [vmem:[%s148_s10] sm:$0x1]  ;;  %s525_s11 = scalar_lea.vmem [#allocation7], %s1208_s14  ;;  %p287_p12 = scmp.lt.s32.totalorder %s1022_s29, 8  ;;  %v257_v59 = vmul.f32 %v256_v51, %v255_v50  ;;  %v270_v61 = vstv %s263_s2 }
  0x83   :  { %v572_v47 = vld [vmem:[%s525_s11 + $0x40] sm:$0x1]  ;;  %s264_s1 = scalar_lea.vmem [#allocation7], %s1112_s3  ;;  %s546_s26 = scalar_lea.vmem [#allocation7], %s1117_s6  ;;  %v141_v55 = vmul.f32 %v140_v45, %v139_v43  ;;  %v154_v57 = vstv %s147_s4  ;;  %767 = vmatpush3.bf16.msra.mxu1 %v766_v35 }
  0x84   :  { %v265_v52 = vld [vmem:[%s264_s1] sm:$0x1]  ;;  %v153_v56 = vadd.f32 %v572_v47, %v149_v46  ;;  %s288_s13 = scalar_select %p287_p12, %s1022_s29, 8  ;;  %v258_v5 = vadd.f32 %v257_v59, %v244_v58 }
  0x85   :  { %v600_v53 = vld [vmem:[%s546_s26 + $0x40] sm:$0x1]  ;;  %s277_s0 = scvt.s32.f32 %s1135_s7  ;;  %s278_s27 = scalar_lea.vmem [#allocation7], %s1121_s5  ;;  %v142_v3 = vadd.f32 %v141_v55, %v128_v54 }
  0x86   :  { %v269_v60 = vadd.f32 %v600_v53, %v265_v52  ;;  %s1215_s13 = smov (!%p191_p5, %s288_s13), 1  ;;  %v279_v62 = vld [vmem:[%s278_s27] sm:$0x1]  ;;  %s549_s17 = scalar_lea.vmem [#allocation7], %s1126_s24  ;;  %v155_v4 = vmul.f32 %v154_v57, %v153_v56 }
  0x87   :  { %v603_v63 = vld [vmem:[%s549_s17 + $0x40] sm:$0x1]  ;;  %s291_s22 = scvt.s32.f32 %s1215_s13  ;;  %v284_v9 = vstv %s277_s0  ;;  %s879_s29 = smov [#allocation10]  }
  0x88   :  { %v271_v6 = vmul.f32 %v270_v61, %v269_v60  ;;  %v283_v7 = vadd.f32 %v603_v63, %v279_v62  ;;  %v156_v11 = vadd.f32 %v155_v4, %v142_v3  ;;  %s494_s3 = sshll.u32 %s879_s29, 4  ;;  %s495_s3 = int_to_ptr.vmem [resolvable:$true] %s494_s3 }
  0x89   :  { %v295_v8 = vstv %s291_s22  ;;  %s842_s8 = scalar_lea.vmem %s495_s3, 32  ;;  %p847_p0 = scmp.lt.s32.totalorder %s495_s3, %s495_s3 }
  0x8a   :  { %780 = vrcp.f32 %v295_v8  ;;  %v272_v13 = vadd.f32 %v271_v6, %v258_v5  ;;  %v285_v14 = vmul.f32 %v284_v9, %v283_v7  ;;  %p843_p13 = scmp.ne.s32.totalorder %s495_s3, %s842_s8  ;;  %p848_p1 = scmp.lt.s32.totalorder %s842_s8, %s842_s8 }
  0x8b   :  { %v779_v12 = vpop.eup %778 }
  0x8c   :  { %v167_v15 = vmul.f32 %v779_v12, %v156_v11  ;;  %v286_v17 = vadd.f32 %v285_v14, %v272_v13  ;;  %p849_p2 = por %p848_p1, %p847_p0 }
  0x8e   :  { %v171_v18 = vrot.slane %v167_v15, %v170_v16  ;;  %p850_p3 = pnand %p849_p2, %p843_p13 }
  0x90   :  { %v172_v23 = vmul.f32 %v578_v20, %v171_v18 }
  0x94   :  { %v781_v19 = vpop.eup %780 }
  0x95   :  { %v297_v21 = vmul.f32 %v781_v19, %v286_v17 }
  0x97   :  { %v301_v24 = vrot.slane %v297_v21, %v170_v16 }
  0x99   :  { %v302_v25 = vmul.f32 %v609_v22, %v301_v24 }
  0x9b   :  { %v303_v26 = vadd.f32 %v302_v25, %v172_v23 }
  0x9d   :  { %683 = vmatmul.mubr.f32.vlgmr.msra.gmra.mrb[0].mxu0 %v303_v26 }
 0x170   :  { %v391_v36 = vpop.f32.mrb[0].mxu0 }
 0x171   :  { %v392_v37 = vadd.f32 %v610_v1, %v391_v36  ;;  %v684_v38 = vpop.f32.mrb[1].mxu0 }
 0x173   :  { %782 = vtanh.f32 %v392_v37 }
 0x17d   :  { %v783_v39 = vpop.eup %782 }
 0x17e   :  { %718 = vmatmul.mubr.f32.vlgmr.msra.gmra.mrb[0].mxu1 %v783_v39 }
 0x251   :  { %v483_v41 = vpop.f32.mrb[0].mxu1 }
 0x252   :  { %v484_v42 = vadd.f32 %v611_v40, %v483_v41  ;;  %v719_v43 = vpop.f32.mrb[1].mxu1 }
 0x254   :  { %487 = vst [vmem:[#allocation10] sm:$0x3] %v484_v42 }
 0x255   :  { %853 = shalt.err (!%p850_p3)
}
 0x256   :  { %s1211_s5 = sld [smem:[#allocation24_spill]] }
 0x25c   :  { %s854_s28 = scalar_lea.hbm %s1211_s5, 32 }
 0x25d   :  { %p855_p4 = scmp.ne.s32.totalorder %s1211_s5, %s854_s28  ;;  %p858_p5 = scmp.lt.u32.totalorder %s854_s28, %s1211_s5 }
 0x25f   :  { %p860_p6 = pnand %p858_p5, %p855_p4 }
 0x261   :  { %863 = shalt.err (!%p860_p6)
}
 0x262   :  { %497 = dma.vmem_to_hbm [thread:$0]  %s495_s3, 32, %s1211_s5, [#allocation9]  }
 0x263   :  { %868 = dma.done.wait [#allocation9], 32  }
 0x264   :  { %869 = vsyncadd [#allocation9], 4294967264 }
 0x265   :  { %501 = vsyncpa [#allocation8], 1 }
 0x266   :  { %502 = vsyncpa [#allocation9], 1 }

</bundles_post_ra>
